<compile_context>
chip_gen: v5e
topology: v5e:2x2
jax: 0.10.0
libtpu: 0.0.40
codegen_flags: <defaults>
</compile_context>

<pallas_src>
import functools

import jax
import jax.numpy as jnp
from jax.experimental import pallas as pl
from jax.experimental.pallas import tpu as pltpu


# Deterministic, in-script "config" (would normally come from the cfg ELEMENTS dict).
ELEMENTS = dict(
    BETA_WEIGHT=1.0,
    BETA_REG_WEIGHT=0.0,
    PHI_REG_WEIGHT=0.0001,
    LEAF_REG_WEIGHT=0.0,
    THETA_WEIGHT=0.01,
    UVD24_WEIGHT=1.0,
    XYZ24_WEIGHT=0.0,
    XYZ_SMPL24_WEIGHT=0.0,
    XYZ_SMPL17_WEIGHT=0.0,
    VERTICE_WEIGHT=0.0,
    TWIST_WEIGHT=0.01,
)

_LANE = 128
_SUBLANE = 8
_MAX_TILE_B = 1024   # 3 slabs x 2 buffers x 1024 x 256 x 4B ~= 6 MiB: safe on v5e/v6e/v7x


def _round_up(x, m):
    return (x + m - 1) // m * m


def _fold_batch(x):
    """Log-depth batch fold: (tile_b, F) -> (8, F) with tree VPU adds only."""
    tb, f = x.shape
    y = x.reshape(tb // _SUBLANE, _SUBLANE, f)
    carry = jnp.zeros((_SUBLANE, f), jnp.float32)
    while y.shape[0] > 1:
        n = y.shape[0]
        half = n // 2
        if n % 2:
            carry = carry + y[n - 1]
        y = y[:half] + y[half:2 * half]
    return y[0] + carry


def _smpl_loss_kernel(p_ref, t_ref, w_ref, sw_ref, out_ref, *, n_beta, o_theta):
    # Upcast in-kernel so the HBM->VMEM DMA moves the native (possibly narrow) dtypes.
    p = p_ref[...].astype(jnp.float32)
    t = t_ref[...].astype(jnp.float32)
    w = w_ref[...].astype(jnp.float32)
    sw = sw_ref[...].astype(jnp.float32)            # (tile_b, 1)

    # Apply smpl_weight to beta / theta columns in-kernel (compile-time mask).
    cols = jax.lax.broadcasted_iota(jnp.int32, p.shape, dimension=1)
    needs_sw = (cols < n_beta) | (cols >= o_theta)
    sw_b = jnp.broadcast_to(sw, p.shape)
    eff_w = w * jnp.where(needs_sw, sw_b, 1.0)

    diff = p - t                      # weight factored out of the subtraction
    dw = diff * eff_w
    sq = dw * dw                      # squared-error path (beta / twist / theta columns)
    ab = jnp.abs(diff) * eff_w        # weighted-L1 path (uvd columns); 64x applied in wrapper

    # Partial batch reduction only (no cross-lane work in the kernel).
    out_ref[0:_SUBLANE, :] = _fold_batch(sq)
    out_ref[_SUBLANE:2 * _SUBLANE, :] = _fold_batch(ab)


def l1_loss_dim_smpl(output, labels, elements=ELEMENTS, size_average=True):
    # TODO(synk): list-valued output['pred_theta_mats'] branch not implemented
    # (only the single-tensor branch of the PyTorch forward is supported).
    pred_shape = jnp.asarray(output['pred_shape'])
    B = pred_shape.shape[0]

    pred_uvd = jnp.asarray(output['pred_uvd_jts'])
    nj = pred_uvd.shape[1]

    def flat(x):
        return jnp.asarray(x).reshape(B, -1)   # native dtype preserved

    pred_shape_f = flat(pred_shape)
    pred_phi_f = flat(output['pred_phi'])
    pred_uvd_f = flat(pred_uvd)
    pred_theta_f = flat(output['pred_theta_mats'])

    target_beta_f = flat(labels['target_beta'])
    target_twist_f = flat(labels['target_twist'])
    target_uvd_f = flat(jnp.asarray(labels['target_uvd_29'])[:, :nj])
    target_theta_f = flat(labels['target_theta'])

    sw = flat(labels['target_smpl_weight'])                 # (B, 1)
    twist_w_f = flat(labels['target_twist_weight'])
    uvd_w_f = flat(jnp.asarray(labels['target_weight_29'])[:, :nj])
    theta_w_f = flat(labels['target_theta_weight'])

    n_beta = pred_shape_f.shape[1]
    n_twist = pred_phi_f.shape[1]
    n_uvd = pred_uvd_f.shape[1]
    n_theta = pred_theta_f.shape[1]
    F = n_beta + n_twist + n_uvd + n_theta
    F_pad = _round_up(F, _LANE)

    o_beta = 0
    o_twist = o_beta + n_beta
    o_uvd = o_twist + n_twist
    o_theta = o_uvd + n_uvd

    # Tile choice: >=2 grid steps when B > 8 (v7x megacore), padding < 1 sublane/tile.
    if B > _SUBLANE:
        num_tiles_target = max(2, pl.cdiv(B, _MAX_TILE_B))
    else:
        num_tiles_target = 1
    tile_b = _round_up(pl.cdiv(B, num_tiles_target), _SUBLANE)
    B_pad = _round_up(B, tile_b)
    num_tiles = B_pad // tile_b

    def make_slab(parts):
        dtype = jnp.result_type(*[p.dtype for p in parts])
        s = jnp.concatenate([p.astype(dtype) for p in parts], axis=1)
        pad_r, pad_c = B_pad - B, F_pad - F
        if pad_r or pad_c:
            s = jnp.pad(s, ((0, pad_r), (0, pad_c)))
        return s

    preds = make_slab([pred_shape_f, pred_phi_f, pred_uvd_f, pred_theta_f])
    targets = make_slab([target_beta_f, target_twist_f, target_uvd_f, target_theta_f])
    # Raw-weight slab (ones for beta columns; sw applied in-kernel) -> no f32 promotion
    # from derived weight segments, HBM bytes stay at the model's native width.
    w_dtype = jnp.result_type(twist_w_f.dtype, uvd_w_f.dtype, theta_w_f.dtype)
    weights = make_slab([jnp.ones((B, n_beta), w_dtype), twist_w_f, uvd_w_f, theta_w_f])
    sw_in = jnp.pad(sw, ((0, B_pad - B), (0, 0)))

    bytes_accessed = int(
        sum(int(s.size) * s.dtype.itemsize for s in (preds, targets, weights, sw_in))
        + num_tiles * 2 * _SUBLANE * F_pad * 4)
    cost = pl.CostEstimate(flops=10 * int(B_pad) * int(F_pad),
                           transcendentals=0,
                           bytes_accessed=bytes_accessed)

    in_spec = pl.BlockSpec((tile_b, F_pad), lambda i: (i, 0))
    sw_spec = pl.BlockSpec((tile_b, 1), lambda i: (i, 0))
    out_spec = pl.BlockSpec((2 * _SUBLANE, F_pad), lambda i: (i, 0))

    kernel = functools.partial(_smpl_loss_kernel, n_beta=n_beta, o_theta=o_theta)

    partials = pl.pallas_call(
        kernel,
        out_shape=jax.ShapeDtypeStruct((num_tiles * 2 * _SUBLANE, F_pad), jnp.float32),
        grid_spec=pltpu.PrefetchScalarGridSpec(
            num_scalar_prefetch=0,
            grid=(num_tiles,),
            in_specs=[in_spec, in_spec, in_spec, sw_spec],
            out_specs=out_spec),
        compiler_params=pltpu.CompilerParams(
            dimension_semantics=("parallel",),
            vmem_limit_bytes=32 * 1024 * 1024,
            allow_input_fusion=[True, True, True, True]),
        cost_estimate=cost,
    )(preds, targets, weights, sw_in)

    # Tiny epilogue on a (2, F_pad) slab: fold tiles + sublanes, then the
    # per-segment scalar reductions and the full-array denominators.
    cols = partials.reshape(num_tiles, 2, _SUBLANE, F_pad).sum(axis=(0, 2))
    sq_col, ab_col = cols[0], cols[1]

    loss_beta = jnp.sum(sq_col[o_beta:o_beta + n_beta]) / float(B * n_beta)
    loss_twist = jnp.sum(sq_col[o_twist:o_twist + n_twist]) / float(B * n_twist)
    uvd_sum = jnp.sum(ab_col[o_uvd:o_uvd + n_uvd]) * 64.0     # 64x folded out of the kernel
    wsum = jnp.sum(uvd_w_f.astype(jnp.float32))               # denominator computed host-side
    if size_average:
        loss_uvd = jnp.where(wsum > 0.0, uvd_sum / jnp.maximum(wsum, 1.0), uvd_sum)
    else:
        loss_uvd = uvd_sum
    loss_theta = jnp.sum(sq_col[o_theta:o_theta + n_theta]) / float(B * n_theta)
    loss_leaf = 0.0 * loss_theta

    loss = (loss_beta * elements['BETA_WEIGHT']
            + loss_twist * elements['TWIST_WEIGHT']
            + loss_uvd * elements['UVD24_WEIGHT']
            + loss_theta * elements['THETA_WEIGHT'])

    return dict(total_loss=loss, loss_beta=loss_beta, loss_twist=loss_twist,
                loss_uvd=loss_uvd, loss_theta=loss_theta, loss_leaf=loss_leaf)


def _reference(output, labels, elements=ELEMENTS):
    """Pure-JAX reference mirroring the PyTorch forward."""
    f32 = lambda x: jnp.asarray(x, jnp.float32)
    mse = lambda a, b: jnp.mean((a - b) ** 2)
    sw = f32(labels['target_smpl_weight'])
    loss_beta = mse(f32(output['pred_shape']) * sw, f32(labels['target_beta']) * sw)
    tw = f32(labels['target_twist_weight'])
    loss_twist = mse(f32(output['pred_phi']) * tw, f32(labels['target_twist']) * tw)
    pred_uvd = f32(output['pred_uvd_jts'])
    nj = pred_uvd.shape[1]
    tuvd = f32(labels['target_uvd_29'])[:, :nj]
    wuvd = f32(labels['target_weight_29'])[:, :nj]
    out = jnp.abs(pred_uvd * 64.0 - tuvd * 64.0) * wuvd
    wsum = jnp.sum(wuvd)
    loss_uvd = jnp.where(wsum > 0, jnp.sum(out) / wsum, jnp.sum(out))
    thw = sw * f32(labels['target_theta_weight'])
    loss_theta = mse(f32(output['pred_theta_mats']) * thw, f32(labels['target_theta']) * thw)
    total = (loss_beta * elements['BETA_WEIGHT'] + loss_twist * elements['TWIST_WEIGHT']
             + loss_uvd * elements['UVD24_WEIGHT'] + loss_theta * elements['THETA_WEIGHT'])
    return dict(total_loss=total, loss_beta=loss_beta, loss_twist=loss_twist,
                loss_uvd=loss_uvd, loss_theta=loss_theta, loss_leaf=0.0 * loss_theta)


if __name__ == "__main__":
    key = jax.random.PRNGKey(0)
    ks = jax.random.split(key, 12)
    B = 2

    output = dict(
        pred_shape=jax.random.normal(ks[0], (B, 10), jnp.float32),
        pred_phi=jax.random.normal(ks[1], (B, 23, 2), jnp.float32),
        pred_uvd_jts=0.5 * jax.random.normal(ks[2], (B, 24, 3), jnp.float32),
        pred_theta_mats=jax.random.normal(ks[3], (B, 96), jnp.float32),
    )
    labels = dict(
        target_smpl_weight=jnp.ones((B, 1), jnp.float32),
        target_beta=jax.random.normal(ks[4], (B, 10), jnp.float32),
        target_twist=jax.random.normal(ks[5], (B, 23, 2), jnp.float32),
        target_twist_weight=(jax.random.uniform(ks[6], (B, 23, 2)) > 0.2).astype(jnp.float32),
        target_uvd_29=0.5 * jax.random.normal(ks[7], (B, 29, 3), jnp.float32),
        target_weight_29=(jax.random.uniform(ks[8], (B, 29, 3)) > 0.2).astype(jnp.float32),
        target_theta=jax.random.normal(ks[9], (B, 96), jnp.float32),
        target_theta_weight=(jax.random.uniform(ks[10], (B, 96)) > 0.2).astype(jnp.float32),
    )

    losses = l1_loss_dim_smpl(output, labels)
    losses = {k: jax.block_until_ready(v) for k, v in losses.items()}

    ref = _reference(output, labels)
    for k in losses:
        assert jnp.allclose(losses[k], ref[k], rtol=1e-5, atol=1e-5), (
            f"mismatch {k}: {losses[k]} vs {ref[k]}")

    print("KERNEL_OK")
</pallas_src>

<mosaic_0001>
module attributes {stable_mosaic.version = 11 : i64} {
  func.func @_smpl_loss_kernel(%arg0: i32, %arg1: memref<8x256xf32, #tpu.memory_space<vmem>>, %arg2: memref<8x256xf32, #tpu.memory_space<vmem>>, %arg3: memref<8x256xf32, #tpu.memory_space<vmem>>, %arg4: memref<8x1xf32, #tpu.memory_space<vmem>>, %arg5: memref<16x256xf32, #tpu.memory_space<vmem>>) attributes {dimension_semantics = [#tpu.dimension_semantics<parallel>], iteration_bounds = array<i64: 1>, scalar_prefetch = 0 : i64, scratch_operands = 0 : i64, tpu.core_type = #tpu.core_type<tc>, window_params = [{transform_indices = @transform_0, window_bounds = array<i64: 8, 256>}, {transform_indices = @transform_1, window_bounds = array<i64: 8, 256>}, {transform_indices = @transform_2, window_bounds = array<i64: 8, 256>}, {transform_indices = @transform_3, window_bounds = array<i64: 8, 1>}, {transform_indices = @transform_4, window_bounds = array<i64: 16, 256>}]} {
    %c0 = arith.constant 0 : index
    %c0_0 = arith.constant 0 : index
    %0 = vector.load %arg1[%c0, %c0_0] : memref<8x256xf32, #tpu.memory_space<vmem>>, vector<8x256xf32>
    %c0_1 = arith.constant 0 : index
    %c0_2 = arith.constant 0 : index
    %1 = vector.load %arg2[%c0_1, %c0_2] : memref<8x256xf32, #tpu.memory_space<vmem>>, vector<8x256xf32>
    %c0_3 = arith.constant 0 : index
    %c0_4 = arith.constant 0 : index
    %2 = vector.load %arg3[%c0_3, %c0_4] : memref<8x256xf32, #tpu.memory_space<vmem>>, vector<8x256xf32>
    %c0_5 = arith.constant 0 : index
    %c0_6 = arith.constant 0 : index
    %3 = vector.load %arg4[%c0_5, %c0_6] : memref<8x1xf32, #tpu.memory_space<vmem>>, vector<8x1xf32>
    %4 = tpu.iota {dimensions = array<i32: 1>} : vector<8x256xi32>
    %c10_i32 = arith.constant 10 : i32
    %5 = vector.broadcast %c10_i32 : i32 to vector<8x256xi32>
    %6 = arith.cmpi slt, %4, %5 : vector<8x256xi32>
    %c128_i32 = arith.constant 128 : i32
    %7 = vector.broadcast %c128_i32 : i32 to vector<8x256xi32>
    %8 = arith.cmpi sge, %4, %7 : vector<8x256xi32>
    %9 = arith.ori %6, %8 : vector<8x256xi1>
    %10 = vector.shape_cast %3 : vector<8x1xf32> to vector<8x1xf32>
    %11 = vector.broadcast %10 : vector<8x1xf32> to vector<8x256xf32>
    %cst = arith.constant 1.000000e+00 : f32
    %12 = vector.broadcast %cst : f32 to vector<8x256xf32>
    %13 = arith.select %9, %11, %12 : vector<8x256xi1>, vector<8x256xf32>
    %14 = arith.mulf %2, %13 : vector<8x256xf32>
    %15 = arith.subf %0, %1 : vector<8x256xf32>
    %16 = arith.mulf %15, %14 : vector<8x256xf32>
    %17 = arith.mulf %16, %16 : vector<8x256xf32>
    %18 = math.absf %15 : vector<8x256xf32>
    %19 = arith.mulf %18, %14 : vector<8x256xf32>
    %20 = vector.shape_cast %17 : vector<8x256xf32> to vector<1x8x256xf32>
    %cst_7 = arith.constant 0.000000e+00 : f32
    %21 = vector.broadcast %cst_7 : f32 to vector<8x256xf32>
    %22 = vector.shape_cast %20 : vector<1x8x256xf32> to vector<8x256xf32>
    %23 = arith.addf %22, %21 : vector<8x256xf32>
    %c0_8 = arith.constant 0 : index
    %c0_9 = arith.constant 0 : index
    %24 = vector.load %arg5[%c0_8, %c0_9] : memref<16x256xf32, #tpu.memory_space<vmem>>, vector<8x256xf32>
    tpu.vector_store %arg5[%c0_8, %c0_9], %23 {strides = array<i32>} : memref<16x256xf32, #tpu.memory_space<vmem>>, vector<8x256xf32>,
    %25 = vector.shape_cast %19 : vector<8x256xf32> to vector<1x8x256xf32>
    %cst_10 = arith.constant 0.000000e+00 : f32
    %26 = vector.broadcast %cst_10 : f32 to vector<8x256xf32>
    %27 = vector.shape_cast %25 : vector<1x8x256xf32> to vector<8x256xf32>
    %28 = arith.addf %27, %26 : vector<8x256xf32>
    %c8 = arith.constant 8 : index
    %c0_11 = arith.constant 0 : index
    %29 = vector.load %arg5[%c8, %c0_11] : memref<16x256xf32, #tpu.memory_space<vmem>>, vector<8x256xf32>
    tpu.vector_store %arg5[%c8, %c0_11], %28 {strides = array<i32>} : memref<16x256xf32, #tpu.memory_space<vmem>>, vector<8x256xf32>,
    return
  }
  func.func @transform_0(%arg0: i32) -> (i32, i32) {
    %c0_i32 = arith.constant 0 : i32
    %c0_i32_0 = arith.constant 0 : i32
    return %arg0, %c0_i32 : i32, i32
  }
  func.func @transform_1(%arg0: i32) -> (i32, i32) {
    %c0_i32 = arith.constant 0 : i32
    %c0_i32_0 = arith.constant 0 : i32
    return %arg0, %c0_i32 : i32, i32
  }
  func.func @transform_2(%arg0: i32) -> (i32, i32) {
    %c0_i32 = arith.constant 0 : i32
    %c0_i32_0 = arith.constant 0 : i32
    return %arg0, %c0_i32 : i32, i32
  }
  func.func @transform_3(%arg0: i32) -> (i32, i32) {
    %c0_i32 = arith.constant 0 : i32
    %c0_i32_0 = arith.constant 0 : i32
    return %arg0, %c0_i32 : i32, i32
  }
  func.func @transform_4(%arg0: i32) -> (i32, i32) {
    %c0_i32 = arith.constant 0 : i32
    %c0_i32_0 = arith.constant 0 : i32
    return %arg0, %c0_i32 : i32, i32
  }
}

</mosaic_0001>

<bundles_post_ra>
// kernel: tpu_custom_call.1
= control target key start
LH: loop header
LB: loop body
LE: loop exit
PB: predicated region body
PF: predicated region fallthrough
CT: control target
= control target key end

     0   :  { %9 = vsyncpa [#allocation3], 0  ;;  %s279_s0 = inlined_call_operand.hbm [shape: f32[8,256], index: 0, kind: input, shape index: {}]   ;;  %s280_s1 = inlined_call_operand.hbm [shape: f32[8,256], index: 1, kind: input, shape index: {}]   ;;  %s281_s2 = inlined_call_operand.hbm [shape: f32[8,256], index: 2, kind: input, shape index: {}]   ;;  %s282_s3 = inlined_call_operand.vmem [shape: f32[8,1], index: 3, kind: input, shape index: {}]   ;;  %s283_s4 = inlined_call_operand.hbm [shape: f32[16,256], index: 4, kind: output, shape index: {}]  }
   0x1   :  { %10 = vsyncpa [#allocation6], 0  ;;  %s28_s17 = sshll.u32 %s280_s1, 4  ;;  %s29_s17 = int_to_ptr.hbm [resolvable:$true] %s28_s17 }
   0x2   :  { %11 = vsyncpa [#allocation4], 0  ;;  %s232_s18 = smov [#allocation5]   ;;  %s17_s22 = sshll.u32 %s279_s0, 4  ;;  %s18_s22 = int_to_ptr.hbm [resolvable:$true] %s17_s22 }
   0x3   :  { %s30_s19 = sshll.u32 %s232_s18, 4  ;;  %s233_s23 = smov [#allocation2]   ;;  %s31_s19 = int_to_ptr.vmem [resolvable:$true] %s30_s19 }
   0x4   :  { %33 = dma.hbm_to_vmem [thread:$0]  %s29_s17, 256, %s31_s19, [#allocation6]  }
   0x5   :  { %s19_s24 = sshll.u32 %s233_s23, 4  ;;  %s39_s27 = sshll.u32 %s281_s2, 4  ;;  %s20_s24 = int_to_ptr.vmem [resolvable:$true] %s19_s24  ;;  %s40_s27 = int_to_ptr.hbm [resolvable:$true] %s39_s27 }
   0x6   :  { %22 = dma.hbm_to_vmem [thread:$0]  %s18_s22, 256, %s20_s24, [#allocation3]  }
   0x7   :  { %s234_s1 = smov [#allocation7]  }
   0x8   :  { %s41_s28 = sshll.u32 %s234_s1, 4  ;;  %s42_s28 = int_to_ptr.vmem [resolvable:$true] %s41_s28 }
   0x9   :  { %44 = dma.hbm_to_vmem [thread:$0]  %s40_s27, 256, %s42_s28, [#allocation6]  }
   0xa   :  { %226 = dma.done.wait [#allocation3], 256  }
   0xb   :  { %227 = vsyncadd [#allocation3], 4294967040 }
   0xc   :  { %228 = dma.done.wait [#allocation6], 512  }
   0xd   :  { %229 = vsyncadd [#allocation6], 4294966784  ;;  %v235_v0 = vmov 0   ;;  %v65_v1 = vld [vmem:[%s282_s3] sm:$0xff]  ;;  %v66_v2 = vlaneseq  ;;  %v60_v3 = vld [vmem:[#allocation2 + $0x8] sm:$0xff]  ;;  %s236_s2 = smov [#allocation8]  }
   0xe   :  { %129 = vset.pattern.permute.xlu0 %v235_v0  ;;  %v62_v4 = vld [vmem:[#allocation5 + $0x8] sm:$0xff]  ;;  %v59_v5 = vld [vmem:[#allocation2] sm:$0xff]  ;;  %v61_v6 = vld [vmem:[#allocation5] sm:$0xff]  ;;  %s106_s3 = sshll.u32 %s236_s2, 4  ;;  %s108_s6 = sshll.u32 %s283_s4, 4  ;;  %s107_s3 = int_to_ptr.vmem [resolvable:$true] %s106_s3  ;;  %s109_s6 = int_to_ptr.hbm [resolvable:$true] %s108_s6 }
   0xf   :  { %77 = vperm.xlu0 %129, %v65_v1   ;;  %v67_v7 = vand.u32 127, %v66_v2  ;;  %v85_v8 = vsub.f32 %v60_v3, %v62_v4  ;;  %v84_v9 = vsub.f32 %v59_v5, %v61_v6  ;;  %v64_v10 = vld [vmem:[#allocation7 + $0x8] sm:$0xff]  ;;  %v63_v11 = vld [vmem:[#allocation7] sm:$0xff]  ;;  %s237_s7 = smov 256   ;;  %s238_s8 = smov 16  }
  0x11   :  { %vm69_vm0 = vcmp.lt.s32.totalorder %v67_v7, 10  ;;  %v91_v12 = vand.u32 2147483647, %v85_v8  ;;  %v90_v14 = vand.u32 2147483647, %v84_v9 }
  0x81   :  { %v78_v13 = vpop.permute.xlu0 %77 }
  0x82   :  { %v80_v15 = vsel %vm69_vm0, %v78_v13, 1.0  ;;  %v83_v16 = vmul.f32 %v78_v13, %v64_v10 }
  0x83   :  { %v82_v17 = vmul.f32 %v80_v15, %v63_v11 }
  0x84   :  { %v87_v18 = vmul.f32 %v85_v8, %v83_v16  ;;  %v93_v19 = vmul.f32 %v91_v12, %v83_v16 }
  0x85   :  { %v86_v20 = vmul.f32 %v84_v9, %v82_v17  ;;  %v92_v21 = vmul.f32 %v90_v14, %v82_v17 }
  0x86   :  { %v89_v22 = vmul.f32 %v87_v18, %v87_v18  ;;  %101 = vst [vmem:[#allocation8 + $0x18] sm:$0xff] %v93_v19 }
  0x87   :  { %v88_v23 = vmul.f32 %v86_v20, %v86_v20  ;;  %100 = vst [vmem:[#allocation8 + $0x10] sm:$0xff] %v92_v21 }
  0x88   :  { %97 = vst [vmem:[#allocation8 + $0x8] sm:$0xff] %v89_v22 }
  0x89   :  { %96 = vst [vmem:[#allocation8] sm:$0xff] %v88_v23 }
  0x8a   :  { %114 = dma.vmem_to_hbm [thread:$0]  %s107_s3, 512, %s109_s6, [#allocation4], %s237_s7, %s237_s7, %s238_s8  }
  0x8b   :  { %230 = dma.done.wait [#allocation4], 512  }
  0x8c   :  { %231 = vsyncadd [#allocation4], 4294966784 }
  0x8d   :  { %119 = vsyncpa [#allocation3], 1 }
  0x8e   :  { %120 = vsyncpa [#allocation6], 1 }
  0x8f   :  { %121 = vsyncpa [#allocation4], 1 }

</bundles_post_ra>
